<compile_context>
chip_gen: v5e
topology: v5e:2x2
jax: 0.10.0
libtpu: 0.0.40
codegen_flags: <defaults>
</compile_context>

<pallas_src>
import functools

import jax
import jax.numpy as jnp
from jax import lax
from jax.experimental import pallas as pl
from jax.experimental.pallas import tpu as pltpu

_HEAD_LANES = 128  # padded width of the fused (actor || critic) head output


def _actor_critic_kernel(x_ref, w1_ref, b1_ref, wh_ref, bh_ref, out_ref, *,
                         num_actions):
    # Shared trunk: h = relu(x @ W1 + b1)                          (TB, H)
    x = x_ref[...]
    h = jnp.dot(x, w1_ref[...], preferred_element_type=jnp.float32) + b1_ref[...]
    h = jnp.maximum(h, 0.0)

    # Fused heads: z = h @ [Wa | Wc | 0-pad] + [ba | bc | 0]       (TB, 128)
    z = jnp.dot(h, wh_ref[...], preferred_element_type=jnp.float32) + bh_ref[...]

    # Stable softmax over the first `num_actions` lanes only.
    lane = lax.broadcasted_iota(jnp.int32, z.shape, 1)
    is_logit = lane < num_actions
    logits = jnp.where(is_logit, z, jnp.float32(-jnp.inf))
    m = jnp.max(logits, axis=-1, keepdims=True)
    e = jnp.exp(logits - m)                      # padded lanes -> exp(-inf) = 0
    denom = jnp.sum(e, axis=-1, keepdims=True)
    probs = e * pl.reciprocal(denom, approx=True)

    # Lane-dense output slab: probs in lanes [0, A), value in lane A, zeros after.
    is_value = lane == num_actions
    out_ref[...] = jnp.where(is_logit, probs,
                             jnp.where(is_value, z, jnp.float32(0.0)))


def actor_critic_forward(x, params, *, tb=256):
    """Fused actor-critic forward pass as a single Pallas kernel.

    x:       (B, D) float32, B divisible by tb
    returns: (policy (B, A) float32, value (B, 1) float32)
    """
    w1, b1, wa, ba, wc, bc = (
        params["w1"], params["b1"], params["wa"], params["ba"],
        params["wc"], params["bc"],
    )
    B, D = x.shape
    H = w1.shape[1]
    A = wa.shape[1]
    assert A + 1 <= _HEAD_LANES, "fused head must fit in one 128-lane slab"
    assert B % tb == 0, "batch must be a multiple of the batch tile"

    # Fuse + lane-pad the two heads once, outside the kernel (weights are tiny).
    # Padded columns are zero; the critic bias bc is folded into the fused bias.
    wh = jnp.zeros((H, _HEAD_LANES), jnp.float32)
    wh = wh.at[:, :A].set(wa).at[:, A:A + 1].set(wc)
    bh = jnp.zeros((1, _HEAD_LANES), jnp.float32)
    bh = bh.at[:, :A].set(ba).at[:, A:A + 1].set(bc)

    kernel = functools.partial(_actor_critic_kernel, num_actions=A)

    out = pl.pallas_call(
        kernel,
        out_shape=jax.ShapeDtypeStruct((B, _HEAD_LANES), jnp.float32),
        grid=(B // tb,),
        in_specs=[
            pl.BlockSpec((tb, D), lambda i: (i, 0)),             # x: streams over batch
            pl.BlockSpec((D, H), lambda i: (0, 0)),              # w1: VMEM-resident
            pl.BlockSpec((1, H), lambda i: (0, 0)),              # b1: VMEM-resident
            pl.BlockSpec((H, _HEAD_LANES), lambda i: (0, 0)),    # fused head weight
            pl.BlockSpec((1, _HEAD_LANES), lambda i: (0, 0)),    # fused head bias
        ],
        out_specs=pl.BlockSpec((tb, _HEAD_LANES), lambda i: (i, 0)),
        compiler_params=pltpu.CompilerParams(
            dimension_semantics=("parallel",)),                  # dual-TC on v7x
    )(x, w1, b1, wh, bh)

    policy = out[:, :A]
    value = out[:, A:A + 1]
    return policy, value


def init_params(key, obs_dim, hidden_dim, num_actions):
    """Deterministic synthetic parameters (small fan-in scaled normals)."""
    k1, k2, k3 = jax.random.split(key, 3)
    w1 = jax.random.normal(k1, (obs_dim, hidden_dim), jnp.float32) / jnp.sqrt(obs_dim)
    b1 = jnp.zeros((1, hidden_dim), jnp.float32)
    wa = jax.random.normal(k2, (hidden_dim, num_actions), jnp.float32) / jnp.sqrt(hidden_dim)
    ba = jnp.zeros((1, num_actions), jnp.float32)
    wc = jax.random.normal(k3, (hidden_dim, 1), jnp.float32) / jnp.sqrt(hidden_dim)
    bc = jnp.zeros((1, 1), jnp.float32)
    return {"w1": w1, "b1": b1, "wa": wa, "ba": ba, "wc": wc, "bc": bc}


if __name__ == "__main__":
    # A3C actor-critic MLP; batch large enough to exercise the batch grid
    # (2 tiles of 256 rows), features/hidden lane-friendly but still small.
    B, D, H, A = 512, 64, 128, 8
    TB = 256

    key = jax.random.PRNGKey(0)
    kx, kp = jax.random.split(key)
    x = jax.random.normal(kx, (B, D), jnp.float32)
    params = init_params(kp, D, H, A)

    policy, value = actor_critic_forward(x, params, tb=TB)
    policy, value = jax.block_until_ready((policy, value))

    # Pure-JAX reference for the same math.
    h = jnp.maximum(x @ params["w1"] + params["b1"], 0.0)
    ref_policy = jax.nn.softmax(h @ params["wa"] + params["ba"], axis=-1)
    ref_value = h @ params["wc"] + params["bc"]

    assert policy.shape == (B, A) and value.shape == (B, 1)
    # approx reciprocal on the softmax denom -> slightly looser tolerances
    assert jnp.allclose(jnp.sum(policy, axis=-1), 1.0, atol=5e-3)
    assert jnp.allclose(policy, ref_policy, atol=5e-3, rtol=5e-3)
    assert jnp.allclose(value, ref_value, atol=1e-3, rtol=1e-3)

    print("KERNEL_OK")
</pallas_src>

<mosaic_0001>
module attributes {stable_mosaic.version = 11 : i64} {
  func.func @_actor_critic_kernel(%arg0: i32, %arg1: memref<256x64xf32, #tpu.memory_space<vmem>>, %arg2: memref<64x128xf32, #tpu.memory_space<vmem>>, %arg3: memref<1x128xf32, #tpu.memory_space<vmem>>, %arg4: memref<128x128xf32, #tpu.memory_space<vmem>>, %arg5: memref<1x128xf32, #tpu.memory_space<vmem>>, %arg6: memref<256x128xf32, #tpu.memory_space<vmem>>) attributes {dimension_semantics = [#tpu.dimension_semantics<parallel>], iteration_bounds = array<i64: 2>, scalar_prefetch = 0 : i64, scratch_operands = 0 : i64, tpu.core_type = #tpu.core_type<tc>, window_params = [{transform_indices = @transform_0, window_bounds = array<i64: 256, 64>}, {pipeline_mode = #tpu.pipeline_mode<synchronous>, transform_indices = @transform_1, window_bounds = array<i64: 64, 128>}, {pipeline_mode = #tpu.pipeline_mode<synchronous>, transform_indices = @transform_2, window_bounds = array<i64: 1, 128>}, {pipeline_mode = #tpu.pipeline_mode<synchronous>, transform_indices = @transform_3, window_bounds = array<i64: 128, 128>}, {pipeline_mode = #tpu.pipeline_mode<synchronous>, transform_indices = @transform_4, window_bounds = array<i64: 1, 128>}, {transform_indices = @transform_5, window_bounds = array<i64: 256, 128>}]} {
    %c0 = arith.constant 0 : index
    %c0_0 = arith.constant 0 : index
    %0 = vector.load %arg1[%c0, %c0_0] : memref<256x64xf32, #tpu.memory_space<vmem>>, vector<256x64xf32>
    %c0_1 = arith.constant 0 : index
    %c0_2 = arith.constant 0 : index
    %1 = vector.load %arg2[%c0_1, %c0_2] : memref<64x128xf32, #tpu.memory_space<vmem>>, vector<64x128xf32>
    %cst = arith.constant dense<0.000000e+00> : vector<256x128xf32>
    %2 = tpu.matmul %0, %1, %cst {dimension_numbers = #tpu.dot_dimension_numbers<[1], [0], [0], [1], [0, 0, 1, 1], [], []>} : vector<256x64xf32>, vector<64x128xf32>, vector<256x128xf32> -> vector<256x128xf32>
    %c0_3 = arith.constant 0 : index
    %c0_4 = arith.constant 0 : index
    %3 = vector.load %arg3[%c0_3, %c0_4] : memref<1x128xf32, #tpu.memory_space<vmem>>, vector<1x128xf32>
    %4 = vector.broadcast %3 : vector<1x128xf32> to vector<256x128xf32>
    %5 = arith.addf %2, %4 : vector<256x128xf32>
    %cst_5 = arith.constant 0.000000e+00 : f32
    %6 = vector.broadcast %cst_5 : f32 to vector<256x128xf32>
    %7 = arith.maximumf %5, %6 : vector<256x128xf32>
    %c0_6 = arith.constant 0 : index
    %c0_7 = arith.constant 0 : index
    %8 = vector.load %arg4[%c0_6, %c0_7] : memref<128x128xf32, #tpu.memory_space<vmem>>, vector<128x128xf32>
    %cst_8 = arith.constant dense<0.000000e+00> : vector<256x128xf32>
    %9 = tpu.matmul %7, %8, %cst_8 {dimension_numbers = #tpu.dot_dimension_numbers<[1], [0], [0], [1], [0, 0, 1, 1], [], []>} : vector<256x128xf32>, vector<128x128xf32>, vector<256x128xf32> -> vector<256x128xf32>
    %c0_9 = arith.constant 0 : index
    %c0_10 = arith.constant 0 : index
    %10 = vector.load %arg5[%c0_9, %c0_10] : memref<1x128xf32, #tpu.memory_space<vmem>>, vector<1x128xf32>
    %11 = vector.broadcast %10 : vector<1x128xf32> to vector<256x128xf32>
    %12 = arith.addf %9, %11 : vector<256x128xf32>
    %13 = tpu.iota {dimensions = array<i32: 1>} : vector<256x128xi32>
    %c8_i32 = arith.constant 8 : i32
    %14 = vector.broadcast %c8_i32 : i32 to vector<256x128xi32>
    %15 = arith.cmpi slt, %13, %14 : vector<256x128xi32>
    %cst_11 = arith.constant 0xFF800000 : f32
    %16 = vector.broadcast %cst_11 : f32 to vector<256x128xf32>
    %17 = arith.select %15, %12, %16 : vector<256x128xi1>, vector<256x128xf32>
    %cst_12 = arith.constant dense<0xFF800000> : vector<256xf32>
    %18 = vector.multi_reduction <maximumf>, %17, %cst_12 [1] : vector<256x128xf32> to vector<256xf32>
    %19 = vector.shape_cast %18 : vector<256xf32> to vector<256x1xf32>
    %20 = vector.broadcast %19 : vector<256x1xf32> to vector<256x128xf32>
    %21 = arith.subf %17, %20 : vector<256x128xf32>
    %22 = math.exp %21 : vector<256x128xf32>
    %cst_13 = arith.constant dense<0.000000e+00> : vector<256xf32>
    %23 = vector.multi_reduction <add>, %22, %cst_13 [1] : vector<256x128xf32> to vector<256xf32>
    %24 = vector.shape_cast %23 : vector<256xf32> to vector<256x1xf32>
    %25 = tpu.reciprocal %24 {approx = true} : vector<256x1xf32> -> vector<256x1xf32>
    %26 = vector.broadcast %25 : vector<256x1xf32> to vector<256x128xf32>
    %27 = arith.mulf %22, %26 : vector<256x128xf32>
    %c8_i32_14 = arith.constant 8 : i32
    %28 = vector.broadcast %c8_i32_14 : i32 to vector<256x128xi32>
    %29 = arith.cmpi eq, %13, %28 : vector<256x128xi32>
    %cst_15 = arith.constant 0.000000e+00 : f32
    %30 = vector.broadcast %cst_15 : f32 to vector<256x128xf32>
    %31 = arith.select %29, %12, %30 : vector<256x128xi1>, vector<256x128xf32>
    %32 = arith.select %15, %27, %31 : vector<256x128xi1>, vector<256x128xf32>
    %c0_16 = arith.constant 0 : index
    %c0_17 = arith.constant 0 : index
    %33 = vector.load %arg6[%c0_16, %c0_17] : memref<256x128xf32, #tpu.memory_space<vmem>>, vector<256x128xf32>
    tpu.vector_store %arg6[%c0_16, %c0_17], %32 {strides = array<i32>} : memref<256x128xf32, #tpu.memory_space<vmem>>, vector<256x128xf32>,
    return
  }
  func.func @transform_0(%arg0: i32) -> (i32, i32) {
    %c0_i32 = arith.constant 0 : i32
    %c0_i32_0 = arith.constant 0 : i32
    return %arg0, %c0_i32 : i32, i32
  }
  func.func @transform_1(%arg0: i32) -> (i32, i32) {
    %c0_i32 = arith.constant 0 : i32
    %c0_i32_0 = arith.constant 0 : i32
    %c0_i32_1 = arith.constant 0 : i32
    return %c0_i32, %c0_i32_0 : i32, i32
  }
  func.func @transform_2(%arg0: i32) -> (i32, i32) {
    %c0_i32 = arith.constant 0 : i32
    %c0_i32_0 = arith.constant 0 : i32
    %c0_i32_1 = arith.constant 0 : i32
    return %c0_i32, %c0_i32_0 : i32, i32
  }
  func.func @transform_3(%arg0: i32) -> (i32, i32) {
    %c0_i32 = arith.constant 0 : i32
    %c0_i32_0 = arith.constant 0 : i32
    %c0_i32_1 = arith.constant 0 : i32
    return %c0_i32, %c0_i32_0 : i32, i32
  }
  func.func @transform_4(%arg0: i32) -> (i32, i32) {
    %c0_i32 = arith.constant 0 : i32
    %c0_i32_0 = arith.constant 0 : i32
    %c0_i32_1 = arith.constant 0 : i32
    return %c0_i32, %c0_i32_0 : i32, i32
  }
  func.func @transform_5(%arg0: i32) -> (i32, i32) {
    %c0_i32 = arith.constant 0 : i32
    %c0_i32_0 = arith.constant 0 : i32
    return %arg0, %c0_i32 : i32, i32
  }
}

</mosaic_0001>

<bundles_post_ra>
// kernel: tpu_custom_call.1
= control target key start
LH: loop header
LB: loop body
LE: loop exit
PB: predicated region body
PF: predicated region fallthrough
CT: control target
= control target key end

     0   :  { %10 = vsyncpa [#allocation3], 0  ;;  %s2455_s0 = inlined_call_operand.vmem [shape: f32[512,64], index: 0, kind: input, shape index: {}]   ;;  %s2456_s1 = inlined_call_operand.vmem [shape: f32[64,128], index: 1, kind: input, shape index: {}]   ;;  %s2457_s2 = inlined_call_operand.vmem [shape: f32[1,128], index: 2, kind: input, shape index: {}]   ;;  %s2458_s3 = inlined_call_operand.vmem [shape: f32[128,128], index: 3, kind: input, shape index: {}]   ;;  %s2459_s4 = inlined_call_operand.vmem [shape: f32[1,128], index: 4, kind: input, shape index: {}]   ;;  %s2460_s5 = inlined_call_operand.hbm [shape: f32[512,128], index: 5, kind: output, shape index: {}]  }
   0x1   :  { %12 = vsyncpa [#allocation3 + $0x1], 0  ;;  %s1495_s18 = smov 0   ;;  %s1497_s19 = smov 0  }
   0x2   :  { %s1499_s20 = smov 0   ;;  %s1501_s21 = smov 0  }
   0x3 LB: > { %s1516_s22 = sadd.s32 4294967295, %s1461_s21   ;;  %s1143_s23 = sadd.s32 4294967294, %s1461_s21   ;;  %s1461_s21 = sphi %s1501_s21, %s2499_s21   ;;  %s1457_s20 = sphi %s1499_s20, %s2498_s20   ;;  %s1453_s19 = sphi %s1497_s19, %s2497_s19   ;;  %s1449_s18 = sphi %s1495_s18, %s2496_s18  }
   0x4   : > { %s1520_s24 = sadd.s32 1, %s1461_s21   ;;  %s135_s25 = sadd.s32 1, %s1457_s20 }
   0x5   : > { %s132_s26 = ssub.s32 %s1461_s21, %s1520_s24  ;;  %p145_p0 = scmp.ne.s32.totalorder %s1457_s20, %s1453_s19 }
   0x6   : > { %p133_p1 = scmp.eq.s32.totalorder %s132_s26, 0  ;;  %p146_p2 = scmp.eq.s32.totalorder %s1516_s22, 1 }
   0x7   : > { %p151_p3 = scmp.ne.s32.totalorder %s1453_s19, %s1449_s18  ;;  %p152_p4 = scmp.eq.s32.totalorder %s1143_s23, 1 }
   0x8   : > { %s1531_s27 = scalar_select %p133_p1, %s1457_s20, %s135_s25  }
   0x9   : > { %p1533_p5 = por %p146_p2, %p145_p0  ;;  %p1537_p6 = por %p152_p4, %p151_p3 }
   0xa   : > { %p1146_p7 = scmp.ge.s32.totalorder %s1461_s21, 1  ;;  %p191_p8 = scmp.lt.s32.totalorder %s1461_s21, 3 }
   0xc   : > { %p192_p9 = pnand %p1146_p7, %p191_p8 }
   0xe   : > { %195 = sbr.rel (%p192_p9) target bundleno = 791 (0x317), region = 40 }
  0x13   : > { %v265_v0 = vld [vmem:[%s2456_s1 + $0x38] sm:$0xff]  ;;  %v264_v1 = vld [vmem:[%s2456_s1 + $0x30] sm:$0xff]  ;;  %s1148_s9 = sshll.u32 %s1516_s22, 5  ;;  %v263_v2 = vld [vmem:[%s2456_s1 + $0x28] sm:$0xff]  ;;  %vm270_vm0 = vcmask 523264   ;;  %s216_s15 = sand.u32 1, %s1453_s19  }
  0x14   : > { %375 = vmatpush.msra.mxu0 %v265_v0  ;;  %1188 = vmatpush.msra.mxu3 %v265_v0  ;;  %p220_p10 = scmp.lt.s32.totalorder %s1148_s9, 63  ;;  %v262_v3 = vld [vmem:[%s2456_s1 + $0x20] sm:$0xff]  ;;  %v261_v4 = vld [vmem:[%s2456_s1 + $0x18] sm:$0xff]  ;;  %v260_v5 = vld [vmem:[%s2456_s1 + $0x10] sm:$0xff]  ;;  %s1187_s23 = sshll.u32 %s1516_s22, 8 }
  0x15   : > { %v259_v6 = vld [vmem:[%s2456_s1 + $0x8] sm:$0xff]  ;;  %v258_v7 = vld [vmem:[%s2456_s1] sm:$0xff]  ;;  %v527_v26 = vld [vmem:[%s2458_s3 + $0x78] sm:$0xff]  ;;  %s1077_s26 = scalar_lea.hbm %s2460_s5, %s1187_s23  ;;  %s1066_s8 = scalar_lea.sflag [#allocation3], %s216_s15 }
  0x16   : > { %376 = vmatpush.msra.mxu0 %v264_v1  ;;  %1189 = vmatpush.msra.mxu3 %v264_v1  ;;  %s2501_s9 = smov (!%p220_p10, %s1148_s9), 63  ;;  %v526_v27 = vld [vmem:[%s2458_s3 + $0x70] sm:$0xff]  ;;  %v525_v28 = vld [vmem:[%s2458_s3 + $0x68] sm:$0xff]  ;;  %v524_v31 = vld [vmem:[%s2458_s3 + $0x60] sm:$0xff]  ;;  %s1080_s6 = sshll.u32 %s1077_s26, 4  ;;  %s1081_s6 = int_to_ptr.hbm [resolvable:$true] %s1080_s6 }
  0x17   : > { %s1149_s16 = sshll.u32 %s2501_s9, 3  ;;  %532 = vmatpush.msra.mxu1 %v527_v26  ;;  %1196 = vmatpush.msra.mxu2 %v527_v26  ;;  %v523_v32 = vld [vmem:[%s2458_s3 + $0x58] sm:$0xff]  ;;  %v522_v33 = vld [vmem:[%s2458_s3 + $0x50] sm:$0xff]  ;;  %v521_v34 = vld [vmem:[%s2458_s3 + $0x48] sm:$0xff]  ;;  %s1413_s9 = sshra.s32 %s1081_s6, 4  ;;  %s1414_s9 = int_to_ptr.hbm [resolvable:$true] %s1413_s9 }
  0x18   : > { %377 = vmatpush.msra.mxu0 %v263_v2  ;;  %1190 = vmatpush.msra.mxu3 %v263_v2  ;;  %s1568_s7 = scalar_lea.vmem %s2455_s0, %s1149_s16  ;;  %v520_v37 = vld [vmem:[%s2458_s3 + $0x40] sm:$0xff]  ;;  %v519_v38 = vld [vmem:[%s2458_s3 + $0x38] sm:$0xff]  ;;  %v518_v39 = vld [vmem:[%s2458_s3 + $0x30] sm:$0xff]  ;;  %s1147_s16 = sshll.u32 %s216_s15, 8 }
  0x19   : > { %v226_v8 = vld [vmem:[%s1568_s7] sm:$0xff]  ;;  %v243_v9 = vld [vmem:[%s1568_s7 + $0x88] sm:$0xff]  ;;  %v244_v11 = vld [vmem:[%s1568_s7 + $0x90] sm:$0xff]  ;;  %533 = vmatpush.msra.mxu1 %v526_v27  ;;  %1198 = vmatpush.msra.mxu2 %v526_v27  ;;  %s2135_s17 = scalar_lea.vmem [#allocation2], %s1147_s16  ;;  %s1415_s10 = scalar_lea.hbm %s1414_s9, 256 }
  0x1a   : > { %378 = vmatpush.msra.mxu0 %v262_v3  ;;  %1191 = vmatpush.msra.mxu3 %v262_v3  ;;  %v227_v10 = vld [vmem:[%s1568_s7 + $0x8] sm:$0xff]  ;;  %v228_v12 = vld [vmem:[%s1568_s7 + $0x10] sm:$0xff]  ;;  %v245_v13 = vld [vmem:[%s1568_s7 + $0x98] sm:$0xff]  ;;  %s1078_s30 = sshll.u32 %s2135_s17, 4  ;;  %p1416_p11 = scmp.ne.s32.totalorder %s1414_s9, %s1415_s10  ;;  %s1079_s30 = int_to_ptr.vmem [resolvable:$true] %s1078_s30 }
  0x1b   : > { %v229_v14 = vld [vmem:[%s1568_s7 + $0x18] sm:$0xff]  ;;  %v246_v15 = vld [vmem:[%s1568_s7 + $0xa0] sm:$0xff]  ;;  %v247_v17 = vld [vmem:[%s1568_s7 + $0xa8] sm:$0xff]  ;;  %534 = vmatpush.msra.mxu1 %v525_v28  ;;  %1200 = vmatpush.msra.mxu2 %v525_v28  ;;  %s1419_s13 = scalar_lea.hbm %s2460_s5, 512  ;;  %p1420_p0 = scmp.lt.s32.totalorder %s1414_s9, %s2460_s5 }
  0x1c   : > { %379 = vmatpush.msra.mxu0 %v261_v4  ;;  %1192 = vmatpush.msra.mxu3 %v261_v4  ;;  %v230_v16 = vld [vmem:[%s1568_s7 + $0x20] sm:$0xff]  ;;  %v231_v18 = vld [vmem:[%s1568_s7 + $0x28] sm:$0xff]  ;;  %v248_v19 = vld [vmem:[%s1568_s7 + $0xb0] sm:$0xff]  ;;  %p1417_p12 = pnand %p1416_p11, %p1533_p5  ;;  %p1421_p1 = scmp.lt.s32.totalorder %s1419_s13, %s1415_s10 }
  0x1d   : > { %v232_v20 = vld [vmem:[%s1568_s7 + $0x30] sm:$0xff]  ;;  %v249_v21 = vld [vmem:[%s1568_s7 + $0xb8] sm:$0xff]  ;;  %v250_v23 = vld [vmem:[%s1568_s7 + $0xc0] sm:$0xff]  ;;  %535 = vmatpush.msra.mxu1 %v524_v31  ;;  %1202 = vmatpush.msra.mxu2 %v524_v31 }
  0x1e   : > { %380 = vmatpush.msra.mxu0 %v260_v5  ;;  %1193 = vmatpush.msra.mxu3 %v260_v5  ;;  %v233_v22 = vld [vmem:[%s1568_s7 + $0x38] sm:$0xff]  ;;  %v234_v24 = vld [vmem:[%s1568_s7 + $0x40] sm:$0xff]  ;;  %v251_v25 = vld [vmem:[%s1568_s7 + $0xc8] sm:$0xff]  ;;  %p1418_p13 = pneg %p1417_p12  ;;  %p1422_p2 = por %p1421_p1, %p1420_p0 }
  0x1f   : > { %v235_v29 = vld [vmem:[%s1568_s7 + $0x48] sm:$0xff]  ;;  %v252_v30 = vld [vmem:[%s1568_s7 + $0xd0] sm:$0xff]  ;;  %536 = vmatpush.msra.mxu1 %v523_v32  ;;  %1204 = vmatpush.msra.mxu2 %v523_v32  ;;  %v253_v36 = vld [vmem:[%s1568_s7 + $0xd8] sm:$0xff] }
  0x20   : > { %381 = vmatpush.msra.mxu0 %v259_v6  ;;  %1194 = vmatpush.msra.mxu3 %v259_v6  ;;  %v236_v35 = vld [vmem:[%s1568_s7 + $0x50] sm:$0xff]  ;;  %v517_v40 = vld [vmem:[%s2458_s3 + $0x28] sm:$0xff]  ;;  %v237_v41 = vld [vmem:[%s1568_s7 + $0x58] sm:$0xff]  ;;  %p1423_p3 = pnand %p1422_p2, %p1418_p13 }
  0x21   : > { %537 = vmatpush.msra.mxu1 %v522_v33  ;;  %1206 = vmatpush.msra.mxu2 %v522_v33  ;;  %v254_v42 = vld [vmem:[%s1568_s7 + $0xe0] sm:$0xff]  ;;  %v515_v44 = vld [vmem:[%s2458_s3 + $0x18] sm:$0xff]  ;;  %v514_v45 = vld [vmem:[%s2458_s3 + $0x10] sm:$0xff] }
  0x22   : > { %382 = vmatpush.msra.mxu0 %v258_v7  ;;  %1195 = vmatpush.msra.mxu3 %v258_v7  ;;  %v516_v43 = vld [vmem:[%s2458_s3 + $0x20] sm:$0xff]  ;;  %v255_v47 = vld [vmem:[%s1568_s7 + $0xe8] sm:$0xff]  ;;  %v256_v51 = vld [vmem:[%s1568_s7 + $0xf0] sm:$0xff] }
  0x23   : > { %1150 = vmatmul.msk.f32.vlgmr.msra.gmra.mxu0 %vm270_vm0, %v226_v8  ;;  %1167 = vmatmul.msk.f32.vlgmr.msra.gmra.mxu3 %vm270_vm0, %v243_v9  ;;  %v238_v46 = vld [vmem:[%s1568_s7 + $0x60] sm:$0xff]  ;;  %v513_v48 = vld [vmem:[%s2458_s3 + $0x8] sm:$0xff]  ;;  %v240_v52 = vld [vmem:[%s1568_s7 + $0x70] sm:$0xff] }
  0x24   : > { %1197 = vmatpush.msrb.mxu3 %v527_v26  ;;  %538 = vmatpush.msra.mxu1 %v521_v34  ;;  %v512_v49 = vld [vmem:[%s2458_s3] sm:$0xff]  ;;  %v239_v50 = vld [vmem:[%s1568_s7 + $0x68] sm:$0xff]  ;;  %v257_v53 = vld [vmem:[%s1568_s7 + $0xf8] sm:$0xff] }
  0x25   : > { %1208 = vmatpush.msra.mxu2 %v521_v34  ;;  %v241_v54 = vld [vmem:[%s1568_s7 + $0x78] sm:$0xff]  ;;  %v1686_v55 = vld [vmem:[%s2457_s2] ss:$0 sm:$0xff] }
  0x26   : > { %1199 = vmatpush.msrb.mxu3 %v526_v27  ;;  %539 = vmatpush.msra.mxu1 %v520_v37  ;;  %v242_v57 = vld [vmem:[%s1568_s7 + $0x80] sm:$0xff] }
  0x27   : > { %1210 = vmatpush.msra.mxu2 %v520_v37 }
  0x28   : > { %1201 = vmatpush.msrb.mxu3 %v525_v28  ;;  %540 = vmatpush.msra.mxu1 %v519_v38 }
  0x29   : > { %1212 = vmatpush.msra.mxu2 %v519_v38 }
  0x2a   : > { %1203 = vmatpush.msrb.mxu3 %v524_v31  ;;  %541 = vmatpush.msra.mxu1 %v518_v39 }
  0x2b   : > { %1151 = vmatmul.msk.f32.gmra.mxu0 %vm270_vm0, %v227_v10  ;;  %1168 = vmatmul.msk.f32.gmra.mxu3 %vm270_vm0, %v244_v11 }
  0x2c   : > { %1205 = vmatpush.msrb.mxu3 %v523_v32  ;;  %542 = vmatpush.msra.mxu1 %v517_v40 }
  0x2d   : > { %1214 = vmatpush.msra.mxu2 %v518_v39 }
  0x2e   : > { %1207 = vmatpush.msrb.mxu3 %v522_v33  ;;  %543 = vmatpush.msra.mxu1 %v516_v43 }
  0x2f   : > { %1216 = vmatpush.msra.mxu2 %v517_v40 }
  0x30   : > { %1209 = vmatpush.msrb.mxu3 %v521_v34  ;;  %544 = vmatpush.msra.mxu1 %v515_v44 }
  0x31   : > { %1218 = vmatpush.msra.mxu2 %v516_v43 }
  0x32   : > { %1211 = vmatpush.msrb.mxu3 %v520_v37  ;;  %545 = vmatpush.msra.mxu1 %v514_v45 }
  0x33   : > { %1152 = vmatmul.msk.f32.gmra.mxu0 %vm270_vm0, %v228_v12  ;;  %1169 = vmatmul.msk.f32.gmra.mxu3 %vm270_vm0, %v245_v13 }
  0x34   : > { %1213 = vmatpush.msrb.mxu3 %v519_v38  ;;  %546 = vmatpush.msra.mxu1 %v513_v48 }
  0x35   : > { %1220 = vmatpush.msra.mxu2 %v515_v44 }
  0x36   : > { %1215 = vmatpush.msrb.mxu3 %v518_v39  ;;  %547 = vmatpush.msra.mxu1 %v512_v49 }
  0x37   : > { %1222 = vmatpush.msra.mxu2 %v514_v45 }
  0x38   : > { %1217 = vmatpush.msrb.mxu3 %v517_v40 }
  0x39   : > { %1224 = vmatpush.msra.mxu2 %v513_v48 }
  0x3a   : > { %1219 = vmatpush.msrb.mxu3 %v516_v43 }
  0x3b   : > { %1153 = vmatmul.msk.f32.gmra.mxu0 %vm270_vm0, %v229_v14  ;;  %1170 = vmatmul.msk.f32.gmra.mxu3 %vm270_vm0, %v246_v15 }
  0x3c   : > { %1221 = vmatpush.msrb.mxu3 %v515_v44  ;;  %1226 = vmatpush.msra.mxu2 %v512_v49 }
  0x3e   : > { %1223 = vmatpush.msrb.mxu3 %v514_v45 }
  0x40   : > { %1225 = vmatpush.msrb.mxu3 %v513_v48 }
  0x42   : > { %1227 = vmatpush.msrb.mxu3 %v512_v49 }
  0x43   : > { %1154 = vmatmul.msk.f32.gmra.mxu0 %vm270_vm0, %v230_v16  ;;  %1171 = vmatmul.msk.f32.gmra.mxu3 %vm270_vm0, %v247_v17 }
  0x4b   : > { %1155 = vmatmul.msk.f32.gmra.mxu0 %vm270_vm0, %v231_v18  ;;  %1172 = vmatmul.msk.f32.gmra.mxu3 %vm270_vm0, %v248_v19 }
  0x53   : > { %1156 = vmatmul.msk.f32.gmra.mxu0 %vm270_vm0, %v232_v20  ;;  %1173 = vmatmul.msk.f32.gmra.mxu3 %vm270_vm0, %v249_v21 }
  0x5b   : > { %1157 = vmatmul.msk.f32.gmra.mxu0 %vm270_vm0, %v233_v22  ;;  %1174 = vmatmul.msk.f32.gmra.mxu3 %vm270_vm0, %v250_v23 }
  0x63   : > { %1158 = vmatmul.msk.f32.gmra.mxu0 %vm270_vm0, %v234_v24  ;;  %1175 = vmatmul.msk.f32.gmra.mxu3 %vm270_vm0, %v251_v25 }
  0x6b   : > { %1159 = vmatmul.msk.f32.gmra.mxu0 %vm270_vm0, %v235_v29  ;;  %1176 = vmatmul.msk.f32.gmra.mxu3 %vm270_vm0, %v252_v30 }
  0x73   : > { %1160 = vmatmul.msk.f32.gmra.mxu0 %vm270_vm0, %v236_v35  ;;  %1177 = vmatmul.msk.f32.gmra.mxu3 %vm270_vm0, %v253_v36 }
  0x7b   : > { %1161 = vmatmul.msk.f32.gmra.mxu0 %vm270_vm0, %v237_v41  ;;  %1178 = vmatmul.msk.f32.gmra.mxu3 %vm270_vm0, %v254_v42 }
  0x83   : > { %1162 = vmatmul.msk.f32.gmra.mxu0 %vm270_vm0, %v238_v46  ;;  %1179 = vmatmul.msk.f32.gmra.mxu3 %vm270_vm0, %v255_v47 }
  0x8b   : > { %1163 = vmatmul.msk.f32.gmra.mxu0 %vm270_vm0, %v239_v50  ;;  %1180 = vmatmul.msk.f32.gmra.mxu3 %vm270_vm0, %v256_v51 }
  0x93   : > { %1164 = vmatmul.msk.f32.gmra.mxu0 %vm270_vm0, %v240_v52  ;;  %1181 = vmatmul.msk.f32.gmra.mxu3 %vm270_vm0, %v257_v53 }
  0x9b   : > { %1165 = vmatmul.msk.f32.gmra.mxu0 %vm270_vm0, %v241_v54 }
  0xa0   : > { %v384_v56 = vpop.f32.mrf.mxu0 }
  0xa1   : > { %v385_v58 = vadd.f32 %v1686_v55, %v384_v56 }
  0xa3   : > { %v480_v59 = vmax.f32 %v385_v58, 0.0  ;;  %1166 = vmatmul.msk.f32.gmra.mxu0 %vm270_vm0, %v242_v57 }
  0xa5   : > { %548 = vmatmul.f32.vlgmr.msra.gmra.mxu1 %v480_v59 }
  0xa6   : > { %v1691_v60 = vpop.f32.mrf.mxu3 }
  0xa8   : > { %v387_v61 = vpop.f32.mrf.mxu0 }
  0xa9   : > { %v388_v62 = vadd.f32 %v1686_v55, %v387_v61  ;;  %v645_v61 = vlaneseq }
  0xab   : > { %v481_v63 = vmax.f32 %v388_v62, 0.0 }
  0xad   : > { %551 = vmatmul.f32.gmra.mxu1 %v481_v63  ;;  %v1734_v63 = vand.u32 127, %v645_v61 }
  0xae   : > { %v1694_v0 = vpop.f32.mrf.mxu3 }
  0xaf   : > { %vm647_vm1 = vcmp.lt.s32.totalorder %v1734_v63, 8  ;;  %vm968_vm2 = vcmp.eq.s32.totalorder %v1734_v63, 8 }
  0xb0   : > { %v390_v1 = vpop.f32.mrf.mxu0 }
  0xb1   : > { %v391_v2 = vadd.f32 %v1686_v55, %v390_v1  ;;  %v1739_v1 = vld [vmem:[%s2459_s4] ss:$0 sm:$0xff] }
  0xb3   : > { %v482_v3 = vmax.f32 %v391_v2, 0.0 }
  0xb5   : > { %554 = vmatmul.f32.gmra.mxu1 %v482_v3 }
  0xb6   : > { %v1697_v4 = vpop.f32.mrf.mxu3 }
  0xb8   : > { %v393_v5 = vpop.f32.mrf.mxu0 }
  0xb9   : > { %v394_v6 = vadd.f32 %v1686_v55, %v393_v5 }
  0xbb   : > { %v483_v7 = vmax.f32 %v394_v6, 0.0 }
  0xbd   : > { %557 = vmatmul.f32.gmra.mxu1 %v483_v7 }
  0xbe   : > { %v1700_v8 = vpop.f32.mrf.mxu3 }
  0xc0   : > { %v396_v9 = vpop.f32.mrf.mxu0 }
  0xc1   : > { %v397_v10 = vadd.f32 %v1686_v55, %v396_v9 }
  0xc3   : > { %v484_v11 = vmax.f32 %v397_v10, 0.0  ;;  %v436_v10 = vadd.f32 %v1686_v55, %v1691_v60 }
  0xc5   : > { %560 = vmatmul.f32.gmra.mxu1 %v484_v11 }
  0xc6   : > { %v1703_v12 = vpop.f32.mrf.mxu3 }
  0xc8   : > { %v399_v13 = vpop.f32.mrf.mxu0 }
  0xc9   : > { %v400_v14 = vadd.f32 %v1686_v55, %v399_v13  ;;  %v497_v13 = vmax.f32 %v436_v10, 0.0 }
  0xcb   : > { %v485_v15 = vmax.f32 %v400_v14, 0.0 }
  0xcd   : > { %563 = vmatmul.f32.gmra.mxu1 %v485_v15 }
  0xce   : > { %v1706_v16 = vpop.f32.mrf.mxu3 }
  0xd0   : > { %v402_v17 = vpop.f32.mrf.mxu0 }
  0xd1   : > { %v403_v18 = vadd.f32 %v1686_v55, %v402_v17  ;;  %v439_v17 = vadd.f32 %v1686_v55, %v1694_v0 }
  0xd3   : > { %v486_v19 = vmax.f32 %v403_v18, 0.0 }
  0xd5   : > { %566 = vmatmul.f32.gmra.mxu1 %v486_v19  ;;  %v498_v19 = vmax.f32 %v439_v17, 0.0 }
  0xd6   : > { %v1709_v20 = vpop.f32.mrf.mxu3 }
  0xd8   : > { %v405_v21 = vpop.f32.mrf.mxu0 }
  0xd9   : > { %v406_v22 = vadd.f32 %v1686_v55, %v405_v21 }
  0xdb   : > { %v487_v23 = vmax.f32 %v406_v22, 0.0  ;;  %v442_v22 = vadd.f32 %v1686_v55, %v1697_v4 }
  0xdd   : > { %569 = vmatmul.f32.gmra.mxu1 %v487_v23 }
  0xde   : > { %v1712_v24 = vpop.f32.mrf.mxu3 }
  0xe0   : > { %v408_v25 = vpop.f32.mrf.mxu0 }
  0xe1   : > { %v409_v26 = vadd.f32 %v1686_v55, %v408_v25  ;;  %v499_v25 = vmax.f32 %v442_v22, 0.0 }
  0xe3   : > { %v488_v27 = vmax.f32 %v409_v26, 0.0 }
  0xe5   : > { %572 = vmatmul.f32.gmra.mxu1 %v488_v27  ;;  %v445_v27 = vadd.f32 %v1686_v55, %v1700_v8 }
  0xe6   : > { %v1715_v28 = vpop.f32.mrf.mxu3 }
  0xe8   : > { %v411_v29 = vpop.f32.mrf.mxu0 }
  0xe9   : > { %v412_v30 = vadd.f32 %v1686_v55, %v411_v29 }
  0xeb   : > { %v489_v31 = vmax.f32 %v412_v30, 0.0  ;;  %v500_v30 = vmax.f32 %v445_v27, 0.0 }
  0xed   : > { %575 = vmatmul.f32.gmra.mxu1 %v489_v31 }
  0xee   : > { %v1718_v32 = vpop.f32.mrf.mxu3 }
  0xf0   : > { %v414_v33 = vpop.f32.mrf.mxu0 }
  0xf1   : > { %v415_v34 = vadd.f32 %v1686_v55, %v414_v33  ;;  %v448_v33 = vadd.f32 %v1686_v55, %v1703_v12 }
  0xf3   : > { %v490_v35 = vmax.f32 %v415_v34, 0.0 }
  0xf5   : > { %578 = vmatmul.f32.gmra.mxu1 %v490_v35  ;;  %v501_v35 = vmax.f32 %v448_v33, 0.0 }
  0xf6   : > { %v1721_v36 = vpop.f32.mrf.mxu3 }
  0xf8   : > { %v417_v37 = vpop.f32.mrf.mxu0 }
  0xf9   : > { %v418_v38 = vadd.f32 %v1686_v55, %v417_v37 }
  0xfb   : > { %v491_v39 = vmax.f32 %v418_v38, 0.0  ;;  %v451_v38 = vadd.f32 %v1686_v55, %v1706_v16 }
  0xfd   : > { %581 = vmatmul.f32.gmra.mxu1 %v491_v39 }
  0xfe   : > { %v1724_v40 = vpop.f32.mrf.mxu3 }
 0x100   : > { %v420_v41 = vpop.f32.mrf.mxu0 }
 0x101   : > { %v421_v42 = vadd.f32 %v1686_v55, %v420_v41  ;;  %v502_v41 = vmax.f32 %v451_v38, 0.0 }
 0x103   : > { %v492_v43 = vmax.f32 %v421_v42, 0.0 }
 0x105   : > { %584 = vmatmul.f32.gmra.mxu1 %v492_v43  ;;  %v454_v43 = vadd.f32 %v1686_v55, %v1709_v20 }
 0x106   : > { %v1727_v44 = vpop.f32.mrf.mxu3 }
 0x107   : > { %v472_v17 = vadd.f32 %v1686_v55, %v1727_v44 }
 0x108   : > { %v423_v45 = vpop.f32.mrf.mxu0 }
 0x109   : > { %v424_v46 = vadd.f32 %v1686_v55, %v423_v45 }
 0x10b   : > { %v493_v47 = vmax.f32 %v424_v46, 0.0  ;;  %v503_v46 = vmax.f32 %v454_v43, 0.0 }
 0x10d   : > { %587 = vmatmul.f32.gmra.mxu1 %v493_v47 }
 0x10e   : > { %v474_v48 = vpop.f32.mrf.mxu3 }
 0x10f   : > { %v475_v49 = vadd.f32 %v1686_v55, %v474_v48  ;;  %v457_v48 = vadd.f32 %v1686_v55, %v1712_v24 }
 0x110   : > { %v426_v50 = vpop.f32.mrf.mxu0 }
 0x111   : > { %v510_v51 = vmax.f32 %v475_v49, 0.0  ;;  %v427_v52 = vadd.f32 %v1686_v55, %v426_v50  ;;  %v504_v50 = vmax.f32 %v457_v48, 0.0 }
 0x113   : > { %v494_v53 = vmax.f32 %v427_v52, 0.0  ;;  %638 = vmatmul.f32.vlgmr.msrb.gmra.mxu3 %v510_v51  ;;  %v460_v52 = vadd.f32 %v1686_v55, %v1715_v28 }
 0x115   : > { %590 = vmatmul.f32.gmra.mxu1 %v494_v53 }
 0x116   : > { %v477_v54 = vpop.f32.mrf.mxu3 }
 0x117   : > { %v478_v56 = vadd.f32 %v1686_v55, %v477_v54  ;;  %v505_v54 = vmax.f32 %v460_v52, 0.0 }
 0x118   : > { %v429_v57 = vpop.f32.mrf.mxu0 }
 0x119   : > { %v511_v58 = vmax.f32 %v478_v56, 0.0  ;;  %v430_v59 = vadd.f32 %v1686_v55, %v429_v57  ;;  %v463_v57 = vadd.f32 %v1686_v55, %v1718_v32 }
 0x11b   : > { %v495_v62 = vmax.f32 %v430_v59, 0.0  ;;  %641 = vmatmul.f32.gmra.mxu3 %v511_v58  ;;  %v506_v59 = vmax.f32 %v463_v57, 0.0 }
 0x11d   : > { %593 = vmatmul.f32.vlgmr.msra.gmra.mxu2 %v495_v62  ;;  %v466_v62 = vadd.f32 %v1686_v55, %v1721_v36 }
 0x120   : > { %v432_v2 = vpop.f32.mrf.mxu0 }
 0x121   : > { %v433_v3 = vadd.f32 %v1686_v55, %v432_v2 }
 0x122   : > { %v549_v5 = vpop.f32.mrf.mxu1 }
 0x123   : > { %v496_v6 = vmax.f32 %v433_v3, 0.0  ;;  %v1744_v7 = vadd.f32 %v1739_v1, %v549_v5  ;;  %v507_v3 = vmax.f32 %v466_v62, 0.0 }
 0x125   : > { %596 = vmatmul.f32.gmra.mxu2 %v496_v6  ;;  %v1749_v9 = vsel %vm647_vm1, %v1744_v7, -inf  ;;  %v469_v6 = vadd.f32 %v1686_v55, %v1724_v40 }
 0x126   : > { %680 = vmax.xlane.f32.xlu0 %v1749_v9 }
 0x12a   : > { %v552_v11 = vpop.f32.mrf.mxu1 }
 0x12b   : > { %v1755_v14 = vadd.f32 %v1739_v1, %v552_v11  ;;  %v508_v11 = vmax.f32 %v469_v6, 0.0 }
 0x12d   : > { %599 = vmatmul.f32.gmra.mxu2 %v497_v13  ;;  %v1760_v15 = vsel %vm647_vm1, %v1755_v14, -inf }
 0x12e   : > { %682 = vmax.xlane.f32.xlu0 %v1760_v15 }
 0x132   : > { %v555_v18 = vpop.f32.mrf.mxu1 }
 0x133   : > { %v1766_v60 = vadd.f32 %v1739_v1, %v555_v18 }
 0x135   : > { %602 = vmatmul.f32.gmra.mxu2 %v498_v19  ;;  %v1771_v21 = vsel %vm647_vm1, %v1766_v60, -inf  ;;  %v509_v19 = vmax.f32 %v472_v17, 0.0 }
 0x136   : > { %684 = vmax.xlane.f32.xlu1 %v1771_v21 }
 0x13a   : > { %v558_v23 = vpop.f32.mrf.mxu1 }
 0x13b   : > { %v1777_v0 = vadd.f32 %v1739_v1, %v558_v23 }
 0x13d   : > { %605 = vmatmul.f32.gmra.mxu2 %v499_v25  ;;  %v1782_v26 = vsel %vm647_vm1, %v1777_v0, -inf }
 0x13e   : > { %686 = vmax.xlane.f32.xlu1 %v1782_v26 }
 0x142   : > { %v561_v29 = vpop.f32.mrf.mxu1 }
 0x143   : > { %v1788_v4 = vadd.f32 %v1739_v1, %v561_v29 }
 0x145   : > { %608 = vmatmul.f32.gmra.mxu2 %v500_v30  ;;  %v1793_v31 = vsel %vm647_vm1, %v1788_v4, -inf }
 0x146   : > { %688 = vmax.xlane.f32.xlu2 %v1793_v31 }
 0x14a   : > { %v564_v34 = vpop.f32.mrf.mxu1 }
 0x14b   : > { %v1799_v8 = vadd.f32 %v1739_v1, %v564_v34 }
 0x14d   : > { %611 = vmatmul.f32.gmra.mxu2 %v501_v35  ;;  %v1804_v37 = vsel %vm647_vm1, %v1799_v8, -inf }
 0x14e   : > { %690 = vmax.xlane.f32.xlu2 %v1804_v37 }
 0x152   : > { %v567_v39 = vpop.f32.mrf.mxu1 }
 0x153   : > { %v1810_v12 = vadd.f32 %v1739_v1, %v567_v39 }
 0x155   : > { %614 = vmatmul.f32.gmra.mxu2 %v502_v41  ;;  %v1815_v42 = vsel %vm647_vm1, %v1810_v12, -inf }
 0x156   : > { %692 = vmax.xlane.f32.xlu0 %v1815_v42 }
 0x15a   : > { %v570_v45 = vpop.f32.mrf.mxu1 }
 0x15b   : > { %v1821_v16 = vadd.f32 %v1739_v1, %v570_v45 }
 0x15d   : > { %617 = vmatmul.f32.gmra.mxu2 %v503_v46  ;;  %v1826_v47 = vsel %vm647_vm1, %v1821_v16, -inf }
 0x15e   : > { %694 = vmax.xlane.f32.xlu1 %v1826_v47 }
 0x162   : > { %v573_v49 = vpop.f32.mrf.mxu1 }
 0x163   : > { %v1832_v20 = vadd.f32 %v1739_v1, %v573_v49 }
 0x165   : > { %620 = vmatmul.f32.gmra.mxu2 %v504_v50  ;;  %v1837_v51 = vsel %vm647_vm1, %v1832_v20, -inf }
 0x166   : > { %696 = vmax.xlane.f32.xlu2 %v1837_v51 }
 0x16a   : > { %v576_v53 = vpop.f32.mrf.mxu1 }
 0x16b   : > { %v1843_v24 = vadd.f32 %v1739_v1, %v576_v53 }
 0x16d   : > { %623 = vmatmul.f32.gmra.mxu2 %v505_v54  ;;  %v1848_v56 = vsel %vm647_vm1, %v1843_v24, -inf }
 0x16e   : > { %698 = vmax.xlane.f32.xlu0 %v1848_v56 }
 0x172   : > { %v579_v58 = vpop.f32.mrf.mxu1 }
 0x173   : > { %v1854_v28 = vadd.f32 %v1739_v1, %v579_v58 }
 0x175   : > { %626 = vmatmul.f32.gmra.mxu2 %v506_v59  ;;  %v1859_v61 = vsel %vm647_vm1, %v1854_v28, -inf }
 0x176   : > { %700 = vmax.xlane.f32.xlu1 %v1859_v61 }
 0x17a   : > { %v582_v2 = vpop.f32.mrf.mxu1 }
 0x17b   : > { %v1865_v32 = vadd.f32 %v1739_v1, %v582_v2 }
 0x17d   : > { %629 = vmatmul.f32.gmra.mxu2 %v507_v3  ;;  %v1870_v5 = vsel %vm647_vm1, %v1865_v32, -inf }
 0x17e   : > { %702 = vmax.xlane.f32.xlu2 %v1870_v5 }
 0x182   : > { %v585_v10 = vpop.f32.mrf.mxu1 }
 0x183   : > { %v1876_v36 = vadd.f32 %v1739_v1, %v585_v10 }
 0x185   : > { %632 = vmatmul.f32.gmra.mxu2 %v508_v11  ;;  %v1881_v13 = vsel %vm647_vm1, %v1876_v36, -inf }
 0x186   : > { %704 = vmax.xlane.f32.xlu0 %v1881_v13 }
 0x18a   : > { %v588_v18 = vpop.f32.mrf.mxu1 }
 0x18b   : > { %v1887_v40 = vadd.f32 %v1739_v1, %v588_v18 }
 0x18d   : > { %635 = vmatmul.f32.gmra.mxu2 %v509_v19  ;;  %v1892_v22 = vsel %vm647_vm1, %v1887_v40, -inf }
 0x18e   : > { %706 = vmax.xlane.f32.xlu1 %v1892_v22 }
 0x192   : > { %v591_v23 = vpop.f32.mrf.mxu1 }
 0x193   : > { %v1896_v25 = vadd.f32 %v1739_v1, %v591_v23 }
 0x195   : > { %v1901_v55 = vsel %vm647_vm1, %v1896_v25, -inf }
 0x196   : > { %v639_v44 = vpop.f32.mrf.mxu3  ;;  %708 = vmax.xlane.f32.xlu2 %v1901_v55 }
 0x197   : > { %v1905_v27 = vadd.f32 %v1739_v1, %v639_v44 }
 0x199   : > { %2474 = vst [vmem:[#allocation5_spill] sm:$0xff] %v1905_v27  ;;  %v681_v29 = vpop.xlane.xlu0 %680  ;;  %v1910_v30 = vsel %vm647_vm1, %v1905_v27, -inf }
 0x19a   : > { %v744_v33 = vsub.f32 %v1749_v9, %v681_v29  ;;  %740 = vmax.xlane.f32.xlu0 %v1910_v30 }
 0x19c   : > { %v776_v34 = vmul.f32 1.442695, %v744_v33 }
 0x19e   : > { %1271 = vpow2.f32 %v776_v34  ;;  %v642_v35 = vpop.f32.mrf.mxu3 }
 0x19f   : > { %v1915_v38 = vadd.f32 %v1739_v1, %v642_v35 }
 0x1a0   : > { %v594_v39 = vpop.f32.mrf.mxu2 }
 0x1a1   : > { %2475 = vst [vmem:[#allocation6_spill] sm:$0xff] %v1915_v38  ;;  %v1918_v41 = vadd.f32 %v1739_v1, %v594_v39  ;;  %v683_v43 = vpop.xlane.xlu0 %682  ;;  %v1923_v45 = vsel %vm647_vm1, %v1915_v38, -inf }
 0x1a2   : > { %v745_v9 = vsub.f32 %v1760_v15, %v683_v43  ;;  %742 = vmax.xlane.f32.xlu1 %v1923_v45 }
 0x1a3   : > { %v1930_v46 = vsel %vm647_vm1, %v1918_v41, -inf }
 0x1a4   : > { %v1932_v48 = vpop.eup %1271  ;;  %v778_v49 = vmul.f32 1.442695, %v745_v9  ;;  %710 = vmax.xlane.f32.xlu0 %v1930_v46 }
 0x1a5   : > { %840 = vadd.xlane.f32.xlu2 %v1932_v48 }
 0x1a6   : > { %1273 = vpow2.f32 %v778_v49 }
 0x1a8   : > { %v597_v50 = vpop.f32.mrf.mxu2 }
 0x1a9   : > { %v1937_v52 = vadd.f32 %v1739_v1, %v597_v50  ;;  %v685_v15 = vpop.xlane.xlu1 %684 }
 0x1aa   : > { %v746_v53 = vsub.f32 %v1771_v21, %v685_v15 }
 0x1ab   : > { %v1943_v54 = vsel %vm647_vm1, %v1937_v52, -inf }
 0x1ac   : > { %v1945_v57 = vpop.eup %1273  ;;  %v780_v58 = vmul.f32 1.442695, %v746_v53  ;;  %712 = vmax.xlane.f32.xlu1 %v1943_v54 }
 0x1ad   : > { %842 = vadd.xlane.f32.xlu0 %v1945_v57 }
 0x1ae   : > { %1275 = vpow2.f32 %v780_v58 }
 0x1b0   : > { %v600_v59 = vpop.f32.mrf.mxu2 }
 0x1b1   : > { %v1950_v62 = vadd.f32 %v1739_v1, %v600_v59  ;;  %v687_v2 = vpop.xlane.xlu1 %686 }
 0x1b2   : > { %v747_v21 = vsub.f32 %v1782_v26, %v687_v2 }
 0x1b3   : > { %v1956_v3 = vsel %vm647_vm1, %v1950_v62, -inf }
 0x1b4   : > { %v1958_v6 = vpop.eup %1275  ;;  %v782_v10 = vmul.f32 1.442695, %v747_v21  ;;  %714 = vmax.xlane.f32.xlu2 %v1956_v3 }
 0x1b5   : > { %844 = vadd.xlane.f32.xlu1 %v1958_v6 }
 0x1b6   : > { %1277 = vpow2.f32 %v782_v10 }
 0x1b8   : > { %v603_v11 = vpop.f32.mrf.mxu2 }
 0x1b9   : > { %v1963_v17 = vadd.f32 %v1739_v1, %v603_v11  ;;  %v689_v18 = vpop.xlane.xlu2 %688 }
 0x1ba   : > { %v748_v26 = vsub.f32 %v1793_v31, %v689_v18 }
 0x1bb   : > { %v1969_v19 = vsel %vm647_vm1, %v1963_v17, -inf }
 0x1bc   : > { %v1971_v23 = vpop.eup %1277  ;;  %v784_v44 = vmul.f32 1.442695, %v748_v26  ;;  %716 = vmax.xlane.f32.xlu0 %v1969_v19 }
 0x1bd   : > { %846 = vadd.xlane.f32.xlu2 %v1971_v23 }
 0x1be   : > { %1279 = vpow2.f32 %v784_v44 }
 0x1c0   : > { %v606_v29 = vpop.f32.mrf.mxu2 }
 0x1c1   : > { %v1976_v33 = vadd.f32 %v1739_v1, %v606_v29  ;;  %v691_v34 = vpop.xlane.xlu2 %690 }
 0x1c2   : > { %v749_v31 = vsub.f32 %v1804_v37, %v691_v34 }
 0x1c3   : > { %v1982_v35 = vsel %vm647_vm1, %v1976_v33, -inf }
 0x1c4   : > { %v1984_v39 = vpop.eup %1279  ;;  %v786_v43 = vmul.f32 1.442695, %v749_v31  ;;  %718 = vmax.xlane.f32.xlu1 %v1982_v35 }
 0x1c5   : > { %848 = vadd.xlane.f32.xlu0 %v1984_v39 }
 0x1c6   : > { %1281 = vpow2.f32 %v786_v43 }
 0x1c8   : > { %v609_v9 = vpop.f32.mrf.mxu2 }
 0x1c9   : > { %v1989_v49 = vadd.f32 %v1739_v1, %v609_v9  ;;  %v693_v50 = vpop.xlane.xlu0 %692 }
 0x1ca   : > { %v750_v37 = vsub.f32 %v1815_v42, %v693_v50 }
 0x1cb   : > { %v1995_v15 = vsel %vm647_vm1, %v1989_v49, -inf }
 0x1cc   : > { %v1997_v53 = vpop.eup %1281  ;;  %v788_v58 = vmul.f32 1.442695, %v750_v37  ;;  %720 = vmax.xlane.f32.xlu2 %v1995_v15 }
 0x1cd   : > { %850 = vadd.xlane.f32.xlu1 %v1997_v53 }
 0x1ce   : > { %1283 = vpow2.f32 %v788_v58 }
 0x1d0   : > { %v612_v59 = vpop.f32.mrf.mxu2 }
 0x1d1   : > { %v2002_v2 = vadd.f32 %v1739_v1, %v612_v59  ;;  %v695_v21 = vpop.xlane.xlu1 %694 }
 0x1d2   : > { %v751_v42 = vsub.f32 %v1826_v47, %v695_v21 }
 0x1d3   : > { %2476 = vst [vmem:[#allocation7_spill] sm:$0xff] %v2002_v2  ;;  %v2008_v10 = vsel %vm647_vm1, %v2002_v2, -inf }
 0x1d4   : > { %v2010_v11 = vpop.eup %1283  ;;  %v790_v18 = vmul.f32 1.442695, %v751_v42  ;;  %722 = vmax.xlane.f32.xlu0 %v2008_v10 }
 0x1d5   : > { %852 = vadd.xlane.f32.xlu2 %v2010_v11 }
 0x1d6   : > { %1285 = vpow2.f32 %v790_v18 }
 0x1d8   : > { %v615_v26 = vpop.f32.mrf.mxu2 }
 0x1d9   : > { %v2015_v44 = vadd.f32 %v1739_v1, %v615_v26  ;;  %v697_v29 = vpop.xlane.xlu2 %696 }
 0x1da   : > { %v752_v47 = vsub.f32 %v1837_v51, %v697_v29 }
 0x1db   : > { %2477 = vst [vmem:[#allocation8_spill] sm:$0xff] %v2015_v44  ;;  %v2021_v34 = vsel %vm647_vm1, %v2015_v44, -inf }
 0x1dc   : > { %v2023_v31 = vpop.eup %1285  ;;  %v792_v43 = vmul.f32 1.442695, %v752_v47  ;;  %724 = vmax.xlane.f32.xlu1 %v2021_v34 }
 0x1dd   : > { %854 = vadd.xlane.f32.xlu0 %v2023_v31 }
 0x1de   : > { %1287 = vpow2.f32 %v792_v43 }
 0x1e0   : > { %v618_v9 = vpop.f32.mrf.mxu2 }
 0x1e1   : > { %v2028_v50 = vadd.f32 %v1739_v1, %v618_v9  ;;  %v699_v37 = vpop.xlane.xlu0 %698 }
 0x1e2   : > { %v753_v51 = vsub.f32 %v1848_v56, %v699_v37 }
 0x1e3   : > { %2478 = vst [vmem:[#allocation9_spill] sm:$0xff] %v2028_v50  ;;  %v2034_v58 = vsel %vm647_vm1, %v2028_v50, -inf }
 0x1e4   : > { %v2036_v59 = vpop.eup %1287  ;;  %v794_v21 = vmul.f32 1.442695, %v753_v51  ;;  %726 = vmax.xlane.f32.xlu2 %v2034_v58 }
 0x1e5   : > { %856 = vadd.xlane.f32.xlu1 %v2036_v59 }
 0x1e6   : > { %1289 = vpow2.f32 %v794_v21 }
 0x1e8   : > { %v621_v42 = vpop.f32.mrf.mxu2 }
 0x1e9   : > { %v2041_v18 = vadd.f32 %v1739_v1, %v621_v42  ;;  %v701_v26 = vpop.xlane.xlu1 %700 }
 0x1ea   : > { %v754_v56 = vsub.f32 %v1859_v61, %v701_v26 }
 0x1eb   : > { %2479 = vst [vmem:[#allocation10_spill] sm:$0xff] %v2041_v18  ;;  %v2047_v29 = vsel %vm647_vm1, %v2041_v18, -inf }
 0x1ec   : > { %v2049_v47 = vpop.eup %1289  ;;  %v796_v43 = vmul.f32 1.442695, %v754_v56  ;;  %728 = vmax.xlane.f32.xlu0 %v2047_v29 }
 0x1ed   : > { %858 = vadd.xlane.f32.xlu2 %v2049_v47 }
 0x1ee   : > { %1291 = vpow2.f32 %v796_v43 }
 0x1f0   : > { %v624_v9 = vpop.f32.mrf.mxu2 }
 0x1f1   : > { %v2054_v37 = vadd.f32 %v1739_v1, %v624_v9  ;;  %v703_v38 = vpop.xlane.xlu2 %702 }
 0x1f3   : > { %2480 = vst [vmem:[#allocation11_spill] sm:$0xff] %v2054_v37  ;;  %v2059_v61 = vsel %vm647_vm1, %v2054_v37, -inf }
 0x1f4   : > { %v2061_v51 = vpop.eup %1291  ;;  %730 = vmax.xlane.f32.xlu1 %v2059_v61 }
 0x1f5   : > { %860 = vadd.xlane.f32.xlu0 %v2061_v51 }
 0x1f8   : > { %v627_v21 = vpop.f32.mrf.mxu2 }
 0x1f9   : > { %v2066_v42 = vadd.f32 %v1739_v1, %v627_v21  ;;  %v705_v18 = vpop.xlane.xlu0 %704 }
 0x1fb   : > { %2481 = vst [vmem:[#allocation12_spill] sm:$0xff] %v2066_v42  ;;  %v2071_v26 = vsel %vm647_vm1, %v2066_v42, -inf  ;;  %v755_v42 = vsub.f32 %v1870_v5, %v703_v38 }
 0x1fc   : > { %732 = vmax.xlane.f32.xlu2 %v2071_v26 }
 0x1fd   : > { %v798_v44 = vmul.f32 1.442695, %v755_v42 }
 0x200   : > { %v630_v56 = vpop.f32.mrf.mxu2 }
 0x201   : > { %v2075_v43 = vadd.f32 %v1739_v1, %v630_v56  ;;  %v707_v9 = vpop.xlane.xlu1 %706 }
 0x202   : > { %v757_v27 = vsub.f32 %v1892_v22, %v707_v9 }
 0x203   : > { %2482 = vst [vmem:[#allocation13_spill] sm:$0xff] %v2075_v43  ;;  %v2081_v21 = vsel %vm647_vm1, %v2075_v43, -inf }
 0x204   : > { %v802_v37 = vmul.f32 1.442695, %v757_v27  ;;  %734 = vmax.xlane.f32.xlu0 %v2081_v21  ;;  %v756_v27 = vsub.f32 %v1881_v13, %v705_v18 }
 0x206   : > { %1293 = vpow2.f32 %v802_v37 }
 0x207   : > { %1295 = vpow2.f32 %v798_v44 }
 0x208   : > { %v633_v50 = vpop.f32.mrf.mxu2 }
 0x209   : > { %v2086_v56 = vadd.f32 %v1739_v1, %v633_v50  ;;  %v709_v2 = vpop.xlane.xlu2 %708  ;;  %v800_v50 = vmul.f32 1.442695, %v756_v27 }
 0x20a   : > { %v758_v5 = vsub.f32 %v1901_v55, %v709_v2 }
 0x20b   : > { %2483 = vst [vmem:[#allocation14_spill] sm:$0xff] %v2086_v56  ;;  %v2091_v22 = vsel %vm647_vm1, %v2086_v56, -inf  ;;  %1297 = vpow2.f32 %v800_v50 }
 0x20c   : > { %v2093_v9 = vpop.eup %1293  ;;  %736 = vmax.xlane.f32.xlu1 %v2091_v22  ;;  %v804_v42 = vmul.f32 1.442695, %v758_v5 }
 0x20d   : > { %866 = vadd.xlane.f32.xlu0 %v2093_v9  ;;  %v2099_v38 = vpop.xlane.xlu0 %740  ;;  %v2104_v43 = vpop.eup %1295 }
 0x20e   : > { %1299 = vpow2.f32 %v804_v42 }
 0x210   : > { %v636_v37 = vpop.f32.mrf.mxu2 }
 0x211   : > { %v2102_v56 = vadd.f32 %v1739_v1, %v636_v37  ;;  %v2116_v18 = vpop.eup %1297 }
 0x213   : > { %2484 = vst [vmem:[#allocation15_spill] sm:$0xff] %v2102_v56  ;;  %v2109_v13 = vsel %vm647_vm1, %v2102_v56, -inf }
 0x214   : > { %862 = vadd.xlane.f32.xlu1 %v2104_v43  ;;  %738 = vmax.xlane.f32.xlu2 %v2109_v13  ;;  %v2119_v5 = vpop.eup %1299 }
 0x215   : > { %v2113_v55 = vpop.xlane.xlu1 %742 }
 0x217   : > { %v711_v2 = vpop.xlane.xlu0 %710 }
 0x218   : > { %v759_v1 = vsub.f32 %v1930_v46, %v711_v2  ;;  %v841_v44 = vpop.xlane.xlu2 %840 }
 0x219   : > { %1301 = vrcp.f32 %v841_v44 }
 0x21a   : > { %v806_v27 = vmul.f32 1.442695, %v759_v1  ;;  %v969_v1 = vsel %vm968_vm2, %v1744_v7, 0.0 }
 0x21c   : > { %1303 = vpow2.f32 %v806_v27  ;;  %868 = vadd.xlane.f32.xlu1 %v2119_v5  ;;  %864 = vadd.xlane.f32.xlu2 %v2116_v18 }
 0x21f   : > { %v1302_v50 = vpop.eup %1301  ;;  %v713_v37 = vpop.xlane.xlu1 %712 }
 0x220   : > { %v936_v46 = vmul.f32 %v1302_v50, %v1932_v48  ;;  %v760_v42 = vsub.f32 %v1943_v54, %v713_v37  ;;  %v843_v2 = vpop.xlane.xlu0 %842 }
 0x221   : > { %1305 = vrcp.f32 %v843_v2 }
 0x222   : > { %v2131_v44 = vpop.eup %1303  ;;  %v1001_v27 = vsel %vm647_vm1, %v936_v46, %v969_v1  ;;  %v808_v56 = vmul.f32 1.442695, %v760_v42  ;;  %v970_v46 = vsel %vm968_vm2, %v1755_v14, 0.0  ;;  %v971_v14 = vsel %vm968_vm2, %v1766_v60, 0.0 }
 0x223   : > { %1033 = vst [vmem:[%s2135_s17] sm:$0xff] %v1001_v27  ;;  %v972_v60 = vsel %vm968_vm2, %v1777_v0, 0.0  ;;  %v973_v0 = vsel %vm968_vm2, %v1788_v4, 0.0  ;;  %v974_v4 = vsel %vm968_vm2, %v1799_v8, 0.0  ;;  %v975_v8 = vsel %vm968_vm2, %v1810_v12, 0.0 }
 0x224   : > { %1307 = vpow2.f32 %v808_v56  ;;  %870 = vadd.xlane.f32.xlu2 %v2131_v44  ;;  %v976_v12 = vsel %vm968_vm2, %v1821_v16, 0.0  ;;  %v977_v16 = vsel %vm968_vm2, %v1832_v20, 0.0  ;;  %v978_v20 = vsel %vm968_vm2, %v1843_v24, 0.0 }
 0x225   : > { %v979_v24 = vsel %vm968_vm2, %v1854_v28, 0.0 }
 0x227   : > { %v1306_v48 = vpop.eup %1305  ;;  %v715_v54 = vpop.xlane.xlu2 %714 }
 0x228   : > { %v937_v50 = vmul.f32 %v1306_v48, %v1945_v57  ;;  %v761_v7 = vsub.f32 %v1956_v3, %v715_v54  ;;  %v845_v37 = vpop.xlane.xlu1 %844 }
 0x229   : > { %1309 = vrcp.f32 %v845_v37 }
 0x22a   : > { %v2144_v42 = vpop.eup %1307  ;;  %v1002_v56 = vsel %vm647_vm1, %v937_v50, %v970_v46  ;;  %v810_v2 = vmul.f32 1.442695, %v761_v7 }
 0x22b   : > { %1034 = vst [vmem:[%s2135_s17 + $0x8] sm:$0xff] %v1002_v56  ;;  %872 = vadd.xlane.f32.xlu0 %v2144_v42 }
 0x22c   : > { %1311 = vpow2.f32 %v810_v2 }
 0x22f   : > { %v1310_v57 = vpop.eup %1309  ;;  %v717_v1 = vpop.xlane.xlu0 %716 }
 0x230   : > { %v938_v3 = vmul.f32 %v1310_v57, %v1958_v6  ;;  %v762_v27 = vsub.f32 %v1969_v19, %v717_v1  ;;  %v847_v48 = vpop.xlane.xlu2 %846 }
 0x231   : > { %1313 = vrcp.f32 %v847_v48 }
 0x232   : > { %v2155_v54 = vpop.eup %1311  ;;  %v1003_v50 = vsel %vm647_vm1, %v938_v3, %v971_v14  ;;  %v812_v7 = vmul.f32 1.442695, %v762_v27 }
 0x233   : > { %1035 = vst [vmem:[%s2135_s17 + $0x10] sm:$0xff] %v1003_v50  ;;  %874 = vadd.xlane.f32.xlu1 %v2155_v54 }
 0x234   : > { %1315 = vpow2.f32 %v812_v7 }
 0x237   : > { %v1314_v6 = vpop.eup %1313  ;;  %v719_v37 = vpop.xlane.xlu1 %718 }
 0x238   : > { %v939_v19 = vmul.f32 %v1314_v6, %v1971_v23  ;;  %v763_v46 = vsub.f32 %v1982_v35, %v719_v37  ;;  %v849_v56 = vpop.xlane.xlu0 %848 }
 0x239   : > { %1317 = vrcp.f32 %v849_v56 }
 0x23a   : > { %v2166_v2 = vpop.eup %1315  ;;  %v1004_v57 = vsel %vm647_vm1, %v939_v19, %v972_v60  ;;  %v814_v1 = vmul.f32 1.442695, %v763_v46 }
 0x23b   : > { %1036 = vst [vmem:[%s2135_s17 + $0x18] sm:$0xff] %v1004_v57  ;;  %876 = vadd.xlane.f32.xlu2 %v2166_v2 }
 0x23c   : > { %1319 = vpow2.f32 %v814_v1 }
 0x23f   : > { %v1318_v23 = vpop.eup %1317  ;;  %v721_v3 = vpop.xlane.xlu2 %720 }
 0x240   : > { %v940_v35 = vmul.f32 %v1318_v23, %v1984_v39  ;;  %v764_v27 = vsub.f32 %v1995_v15, %v721_v3  ;;  %v851_v48 = vpop.xlane.xlu1 %850 }
 0x241   : > { %1321 = vrcp.f32 %v851_v48 }
 0x242   : > { %v2177_v14 = vpop.eup %1319  ;;  %v1005_v50 = vsel %vm647_vm1, %v940_v35, %v973_v0  ;;  %v816_v7 = vmul.f32 1.442695, %v764_v27 }
 0x243   : > { %1037 = vst [vmem:[%s2135_s17 + $0x20] sm:$0xff] %v1005_v50  ;;  %878 = vadd.xlane.f32.xlu0 %v2177_v14 }
 0x244   : > { %1323 = vpow2.f32 %v816_v7 }
 0x247   : > { %v1322_v39 = vpop.eup %1321  ;;  %v723_v6 = vpop.xlane.xlu0 %722 }
 0x248   : > { %v941_v15 = vmul.f32 %v1322_v39, %v1997_v53  ;;  %v765_v37 = vsub.f32 %v2008_v10, %v723_v6  ;;  %v853_v19 = vpop.xlane.xlu2 %852 }
 0x249   : > { %1325 = vrcp.f32 %v853_v19 }
 0x24a   : > { %v2188_v46 = vpop.eup %1323  ;;  %v1006_v56 = vsel %vm647_vm1, %v941_v15, %v974_v4  ;;  %v818_v60 = vmul.f32 1.442695, %v765_v37 }
 0x24b   : > { %1038 = vst [vmem:[%s2135_s17 + $0x28] sm:$0xff] %v1006_v56  ;;  %880 = vadd.xlane.f32.xlu1 %v2188_v46 }
 0x24c   : > { %1327 = vpow2.f32 %v818_v60 }
 0x24f   : > { %v1326_v53 = vpop.eup %1325  ;;  %v725_v57 = vpop.xlane.xlu1 %724 }
 0x250   : > { %v942_v10 = vmul.f32 %v1326_v53, %v2010_v11  ;;  %v766_v1 = vsub.f32 %v2021_v34, %v725_v57  ;;  %v855_v23 = vpop.xlane.xlu0 %854 }
 0x251   : > { %1329 = vrcp.f32 %v855_v23 }
 0x252   : > { %v2199_v3 = vpop.eup %1327  ;;  %v1007_v35 = vsel %vm647_vm1, %v942_v10, %v975_v8  ;;  %v820_v27 = vmul.f32 1.442695, %v766_v1 }
 0x253   : > { %1039 = vst [vmem:[%s2135_s17 + $0x30] sm:$0xff] %v1007_v35  ;;  %882 = vadd.xlane.f32.xlu2 %v2199_v3 }
 0x254   : > { %1331 = vpow2.f32 %v820_v27 }
 0x257   : > { %v1330_v11 = vpop.eup %1329  ;;  %v727_v48 = vpop.xlane.xlu2 %726 }
 0x258   : > { %v943_v34 = vmul.f32 %v1330_v11, %v2023_v31  ;;  %v767_v0 = vsub.f32 %v2034_v58, %v727_v48  ;;  %v857_v50 = vpop.xlane.xlu1 %856 }
 0x259   : > { %1333 = vrcp.f32 %v857_v50 }
 0x25a   : > { %v2210_v7 = vpop.eup %1331  ;;  %v1008_v39 = vsel %vm647_vm1, %v943_v34, %v976_v12  ;;  %v822_v6 = vmul.f32 1.442695, %v767_v0  ;;  %v774_v12 = vsub.f32 %v1910_v30, %v2099_v38 }
 0x25b   : > { %1040 = vst [vmem:[%s2135_s17 + $0x38] sm:$0xff] %v1008_v39  ;;  %884 = vadd.xlane.f32.xlu0 %v2210_v7 }
 0x25c   : > { %1335 = vpow2.f32 %v822_v6  ;;  %v836_v28 = vmul.f32 1.442695, %v774_v12 }
 0x25f   : > { %v1334_v31 = vpop.eup %1333  ;;  %v729_v15 = vpop.xlane.xlu0 %728 }
 0x260   : > { %v944_v58 = vmul.f32 %v1334_v31, %v2036_v59  ;;  %v768_v37 = vsub.f32 %v2047_v29, %v729_v15  ;;  %v859_v19 = vpop.xlane.xlu2 %858 }
 0x261   : > { %1337 = vrcp.f32 %v859_v19 }
 0x262   : > { %v2221_v4 = vpop.eup %1335  ;;  %v1009_v56 = vsel %vm647_vm1, %v944_v58, %v977_v16  ;;  %v824_v60 = vmul.f32 1.442695, %v768_v37 }
 0x263   : > { %1041 = vst [vmem:[%s2135_s17 + $0x40] sm:$0xff] %v1009_v56  ;;  %886 = vadd.xlane.f32.xlu1 %v2221_v4 }
 0x264   : > { %1339 = vpow2.f32 %v824_v60  ;;  %v982_v60 = vsel %vm968_vm2, %v1887_v40, 0.0  ;;  %v980_v40 = vsel %vm968_vm2, %v1865_v32, 0.0 }
 0x267   : > { %v1338_v59 = vpop.eup %1337  ;;  %v731_v53 = vpop.xlane.xlu1 %730 }
 0x268   : > { %v945_v29 = vmul.f32 %v1338_v59, %v2049_v47  ;;  %v769_v57 = vsub.f32 %v2059_v61, %v731_v53  ;;  %v861_v10 = vpop.xlane.xlu0 %860 }
 0x269   : > { %1341 = vrcp.f32 %v861_v10 }
 0x26a   : > { %v2232_v1 = vpop.eup %1339  ;;  %v1010_v23 = vsel %vm647_vm1, %v945_v29, %v978_v20  ;;  %v826_v8 = vmul.f32 1.442695, %v769_v57 }
 0x26b   : > { %1042 = vst [vmem:[%s2135_s17 + $0x48] sm:$0xff] %v1010_v23  ;;  %888 = vadd.xlane.f32.xlu2 %v2232_v1 }
 0x26c   : > { %1343 = vpow2.f32 %v826_v8 }
 0x26f   : > { %v1342_v47 = vpop.eup %1341  ;;  %v733_v35 = vpop.xlane.xlu2 %732 }
 0x270   : > { %v946_v61 = vmul.f32 %v1342_v47, %v2061_v51  ;;  %v770_v27 = vsub.f32 %v2071_v26, %v733_v35  ;;  %v983_v47 = vsel %vm968_vm2, %v1896_v25, 0.0 }
 0x272   : > { %v2243_v11 = vpop.eup %1343  ;;  %v1011_v48 = vsel %vm647_vm1, %v946_v61, %v979_v24  ;;  %v828_v34 = vmul.f32 1.442695, %v770_v27  ;;  %v981_v61 = vsel %vm968_vm2, %v1876_v36, 0.0 }
 0x273   : > { %1043 = vst [vmem:[%s2135_s17 + $0x50] sm:$0xff] %v1011_v48  ;;  %890 = vadd.xlane.f32.xlu0 %v2243_v11 }
 0x274   : > { %1345 = vpow2.f32 %v828_v34 }
 0x277   : > { %v735_v0 = vpop.xlane.xlu0 %734 }
 0x278   : > { %v771_v50 = vsub.f32 %v2081_v21, %v735_v0  ;;  %v775_v21 = vsub.f32 %v1923_v45, %v2113_v55 }
 0x27a   : > { %v2250_v51 = vpop.eup %1345  ;;  %v830_v26 = vmul.f32 1.442695, %v771_v50  ;;  %v838_v38 = vmul.f32 1.442695, %v775_v21 }
 0x27b   : > { %892 = vadd.xlane.f32.xlu1 %v2250_v51 }
 0x27c   : > { %1347 = vpow2.f32 %v830_v26  ;;  %v985_v26 = vsel %vm968_vm2, %v1937_v52, 0.0 }
 0x27f   : > { %v737_v39 = vpop.xlane.xlu1 %736 }
 0x280   : > { %v772_v6 = vsub.f32 %v2091_v22, %v737_v39  ;;  %v867_v31 = vpop.xlane.xlu0 %866  ;;  %v986_v39 = vsel %vm968_vm2, %v1950_v62, 0.0 }
 0x281   : > { %1349 = vrcp.f32 %v867_v31 }
 0x282   : > { %v2256_v15 = vpop.eup %1347  ;;  %v832_v58 = vmul.f32 1.442695, %v772_v6  ;;  %1351 = vpow2.f32 %v836_v28 }
 0x283   : > { %894 = vadd.xlane.f32.xlu2 %v2256_v15 }
 0x284   : > { %1353 = vpow2.f32 %v832_v58  ;;  %v987_v58 = vsel %vm968_vm2, %v1963_v17, 0.0 }
 0x287   : > { %v1350_v30 = vpop.eup %1349  ;;  %v863_v37 = vpop.xlane.xlu1 %862 }
 0x288   : > { %v739_v19 = vpop.xlane.xlu2 %738  ;;  %v949_v16 = vmul.f32 %v1350_v30, %v2093_v9  ;;  %1355 = vrcp.f32 %v863_v37  ;;  %v2263_v56 = vpop.eup %1351 }
 0x289   : > { %v773_v22 = vsub.f32 %v2109_v13, %v739_v19  ;;  %1357 = vpow2.f32 %v838_v38  ;;  %v988_v38 = vsel %vm968_vm2, %v1976_v33, 0.0 }
 0x28a   : > { %v2268_v45 = vpop.eup %1353  ;;  %v1014_v55 = vsel %vm647_vm1, %v949_v16, %v982_v60  ;;  %v989_v16 = vsel %vm968_vm2, %v1989_v49, 0.0 }
 0x28b   : > { %v834_v59 = vmul.f32 1.442695, %v773_v22  ;;  %1046 = vst [vmem:[%s2135_s17 + $0x68] sm:$0xff] %v1014_v55  ;;  %896 = vadd.xlane.f32.xlu0 %v2268_v45  ;;  %900 = vadd.xlane.f32.xlu2 %v2263_v56  ;;  %v2485_v55 = vld [vmem:[#allocation7_spill] sm:$0xff] }
 0x28d   : > { %1359 = vpow2.f32 %v834_v59  ;;  %v990_v59 = vsel %vm968_vm2, %v2485_v55, 0.0 }
 0x28e   : > { %v1356_v9 = vpop.eup %1355 }
 0x28f   : > { %v947_v13 = vmul.f32 %v1356_v9, %v2104_v43  ;;  %v869_v53 = vpop.xlane.xlu1 %868  ;;  %v2279_v57 = vpop.eup %1357 }
 0x290   : > { %v865_v29 = vpop.xlane.xlu2 %864  ;;  %1361 = vrcp.f32 %v869_v53  ;;  %v2486_v53 = vld [vmem:[#allocation8_spill] sm:$0xff] }
 0x291   : > { %v1012_v10 = vsel %vm647_vm1, %v947_v13, %v980_v40  ;;  %1363 = vrcp.f32 %v865_v29  ;;  %v991_v29 = vsel %vm968_vm2, %v2486_v53, 0.0 }
 0x292   : > { %1044 = vst [vmem:[%s2135_s17 + $0x58] sm:$0xff] %v1012_v10 }
 0x293   : > { %v2283_v20 = vpop.eup %1359  ;;  %902 = vadd.xlane.f32.xlu0 %v2279_v57 }
 0x294   : > { %898 = vadd.xlane.f32.xlu1 %v2283_v20 }
 0x296   : > { %v1362_v43 = vpop.eup %1361 }
 0x297   : > { %v1364_v23 = vpop.eup %1363  ;;  %v950_v32 = vmul.f32 %v1362_v43, %v2119_v5 }
 0x298   : > { %v871_v8 = vpop.xlane.xlu2 %870  ;;  %v948_v35 = vmul.f32 %v1364_v23, %v2116_v18  ;;  %v984_v18 = vsel %vm968_vm2, %v1918_v41, 0.0  ;;  %v2487_v23 = vld [vmem:[#allocation9_spill] sm:$0xff] }
 0x299   : > { %1365 = vrcp.f32 %v871_v8  ;;  %v1015_v27 = vsel %vm647_vm1, %v950_v32, %v983_v47  ;;  %v992_v32 = vsel %vm968_vm2, %v2487_v23, 0.0 }
 0x29a   : > { %1047 = vst [vmem:[%s2135_s17 + $0x70] sm:$0xff] %v1015_v27  ;;  %v1013_v5 = vsel %vm647_vm1, %v948_v35, %v981_v61  ;;  %v2488_v61 = vld [vmem:[#allocation10_spill] sm:$0xff] }
 0x29b   : > { %1045 = vst [vmem:[%s2135_s17 + $0x60] sm:$0xff] %v1013_v5  ;;  %v993_v27 = vsel %vm968_vm2, %v2488_v61, 0.0 }
 0x29e   : > { %v873_v48 = vpop.xlane.xlu0 %872 }
 0x29f   : > { %v1366_v24 = vpop.eup %1365  ;;  %1367 = vrcp.f32 %v873_v48 }
 0x2a0   : > { %v951_v25 = vmul.f32 %v1366_v24, %v2131_v44 }
 0x2a2   : > { %v1016_v36 = vsel %vm647_vm1, %v951_v25, %v984_v18  ;;  %v2489_v25 = vld [vmem:[#allocation11_spill] sm:$0xff] }
 0x2a3   : > { %1048 = vst [vmem:[%s2135_s17 + $0x78] sm:$0xff] %v1016_v36  ;;  %v994_v18 = vsel %vm968_vm2, %v2489_v25, 0.0 }
 0x2a5   : > { %v1368_v34 = vpop.eup %1367 }
 0x2a6   : > { %v952_v0 = vmul.f32 %v1368_v34, %v2144_v42  ;;  %v875_v50 = vpop.xlane.xlu1 %874 }
 0x2a7   : > { %1369 = vrcp.f32 %v875_v50  ;;  %v2490_v50 = vld [vmem:[#allocation12_spill] sm:$0xff] }
 0x2a8   : > { %v1017_v44 = vsel %vm647_vm1, %v952_v0, %v985_v26  ;;  %v995_v26 = vsel %vm968_vm2, %v2490_v50, 0.0 }
 0x2a9   : > { %1049 = vst [vmem:[%s2135_s17 + $0x80] sm:$0xff] %v1017_v44 }
 0x2ad   : > { %v1370_v41 = vpop.eup %1369 }
 0x2ae   : > { %v953_v12 = vmul.f32 %v1370_v41, %v2155_v54  ;;  %v877_v28 = vpop.xlane.xlu2 %876 }
 0x2af   : > { %1371 = vrcp.f32 %v877_v28 }
 0x2b0   : > { %v1018_v42 = vsel %vm647_vm1, %v953_v12, %v986_v39  ;;  %v2491_v39 = vld [vmem:[#allocation13_spill] sm:$0xff] }
 0x2b1   : > { %1050 = vst [vmem:[%s2135_s17 + $0x88] sm:$0xff] %v1018_v42 }
 0x2b5   : > { %v1372_v52 = vpop.eup %1371 }
 0x2b6   : > { %v954_v6 = vmul.f32 %v1372_v52, %v2166_v2  ;;  %v879_v31 = vpop.xlane.xlu0 %878 }
 0x2b7   : > { %1373 = vrcp.f32 %v879_v31 }
 0x2b8   : > { %v1019_v54 = vsel %vm647_vm1, %v954_v6, %v987_v58 }
 0x2b9   : > { %1051 = vst [vmem:[%s2135_s17 + $0x90] sm:$0xff] %v1019_v54  ;;  %v2492_v54 = vld [vmem:[#allocation5_spill] sm:$0xff] }
 0x2bd   : > { %v1374_v62 = vpop.eup %1373 }
 0x2be   : > { %v955_v21 = vmul.f32 %v1374_v62, %v2177_v14  ;;  %v881_v30 = vpop.xlane.xlu1 %880  ;;  %v999_v62 = vsel %vm968_vm2, %v2492_v54, 0.0 }
 0x2bf   : > { %1375 = vrcp.f32 %v881_v30  ;;  %v2493_v30 = vld [vmem:[#allocation14_spill] sm:$0xff] }
 0x2c0   : > { %v1020_v2 = vsel %vm647_vm1, %v955_v21, %v988_v38  ;;  %v997_v38 = vsel %vm968_vm2, %v2493_v30, 0.0 }
 0x2c1   : > { %1052 = vst [vmem:[%s2135_s17 + $0x98] sm:$0xff] %v1020_v2 }
 0x2c5   : > { %v1376_v17 = vpop.eup %1375 }
 0x2c6   : > { %v956_v37 = vmul.f32 %v1376_v17, %v2188_v46  ;;  %v883_v19 = vpop.xlane.xlu2 %882 }
 0x2c7   : > { %1377 = vrcp.f32 %v883_v19  ;;  %v2494_v19 = vld [vmem:[#allocation15_spill] sm:$0xff] }
 0x2c8   : > { %v1021_v14 = vsel %vm647_vm1, %v956_v37, %v989_v16  ;;  %v998_v16 = vsel %vm968_vm2, %v2494_v19, 0.0 }
 0x2c9   : > { %1053 = vst [vmem:[%s2135_s17 + $0xa0] sm:$0xff] %v1021_v14 }
 0x2cd   : > { %v1378_v33 = vpop.eup %1377 }
 0x2ce   : > { %v957_v22 = vmul.f32 %v1378_v33, %v2199_v3  ;;  %v885_v60 = vpop.xlane.xlu0 %884  ;;  %v2495_v33 = vld [vmem:[#allocation6_spill] sm:$0xff] }
 0x2cf   : > { %1379 = vrcp.f32 %v885_v60 }
 0x2d0   : > { %v1022_v46 = vsel %vm647_vm1, %v957_v22, %v990_v59  ;;  %v1000_v22 = vsel %vm968_vm2, %v2495_v33, 0.0 }
 0x2d1   : > { %1054 = vst [vmem:[%s2135_s17 + $0xa8] sm:$0xff] %v1022_v46 }
 0x2d5   : > { %v1380_v49 = vpop.eup %1379 }
 0x2d6   : > { %v958_v9 = vmul.f32 %v1380_v49, %v2210_v7  ;;  %v887_v13 = vpop.xlane.xlu1 %886 }
 0x2d7   : > { %1381 = vrcp.f32 %v887_v13 }
 0x2d8   : > { %v1023_v3 = vsel %vm647_vm1, %v958_v9, %v991_v29 }
 0x2d9   : > { %1055 = vst [vmem:[%s2135_s17 + $0xb0] sm:$0xff] %v1023_v3 }
 0x2dd   : > { %v1382_v40 = vpop.eup %1381 }
 0x2de   : > { %v959_v10 = vmul.f32 %v1382_v40, %v2221_v4  ;;  %v889_v43 = vpop.xlane.xlu2 %888 }
 0x2df   : > { %1383 = vrcp.f32 %v889_v43 }
 0x2e0   : > { %v1024_v7 = vsel %vm647_vm1, %v959_v10, %v992_v32 }
 0x2e1   : > { %1056 = vst [vmem:[%s2135_s17 + $0xb8] sm:$0xff] %v1024_v7 }
 0x2e5   : > { %v1384_v8 = vpop.eup %1383 }
 0x2e6   : > { %v960_v47 = vmul.f32 %v1384_v8, %v2232_v1  ;;  %v891_v35 = vpop.xlane.xlu0 %890 }
 0x2e7   : > { %1385 = vrcp.f32 %v891_v35 }
 0x2e8   : > { %v1025_v4 = vsel %vm647_vm1, %v960_v47, %v993_v27 }
 0x2e9   : > { %1057 = vst [vmem:[%s2135_s17 + $0xc0] sm:$0xff] %v1025_v4 }
 0x2ed   : > { %v1386_v5 = vpop.eup %1385 }
 0x2ee   : > { %v961_v24 = vmul.f32 %v1386_v5, %v2243_v11  ;;  %v893_v48 = vpop.xlane.xlu1 %892 }
 0x2ef   : > { %1387 = vrcp.f32 %v893_v48 }
 0x2f0   : > { %v1026_v1 = vsel %vm647_vm1, %v961_v24, %v994_v18 }
 0x2f1   : > { %1058 = vst [vmem:[%s2135_s17 + $0xc8] sm:$0xff] %v1026_v1 }
 0x2f5   : > { %v1388_v36 = vpop.eup %1387 }
 0x2f6   : > { %v962_v34 = vmul.f32 %v1388_v36, %v2250_v51  ;;  %v895_v0 = vpop.xlane.xlu2 %894  ;;  %v996_v51 = vsel %vm968_vm2, %v2491_v39, 0.0 }
 0x2f7   : > { %1389 = vrcp.f32 %v895_v0 }
 0x2f8   : > { %v1027_v11 = vsel %vm647_vm1, %v962_v34, %v995_v26 }
 0x2f9   : > { %1059 = vst [vmem:[%s2135_s17 + $0xd0] sm:$0xff] %v1027_v11 }
 0x2fd   : > { %v1390_v44 = vpop.eup %1389 }
 0x2fe   : > { %v963_v41 = vmul.f32 %v1390_v44, %v2256_v15  ;;  %v901_v12 = vpop.xlane.xlu2 %900  ;;  %v897_v28 = vpop.xlane.xlu0 %896 }
 0x2ff   : > { %1391 = vrcp.f32 %v901_v12 }
 0x300   : > { %v1028_v42 = vsel %vm647_vm1, %v963_v41, %v996_v51  ;;  %1393 = vrcp.f32 %v897_v28 }
 0x301   : > { %1060 = vst [vmem:[%s2135_s17 + $0xd8] sm:$0xff] %v1028_v42 }
 0x305   : > { %v1392_v52 = vpop.eup %1391 }
 0x306   : > { %v1394_v6 = vpop.eup %1393  ;;  %v966_v31 = vmul.f32 %v1392_v52, %v2263_v56  ;;  %v903_v58 = vpop.xlane.xlu0 %902 }
 0x307   : > { %v899_v15 = vpop.xlane.xlu1 %898  ;;  %v964_v21 = vmul.f32 %v1394_v6, %v2268_v45 }
 0x308   : > { %1395 = vrcp.f32 %v899_v15  ;;  %v1031_v2 = vsel %vm647_vm1, %v966_v31, %v999_v62 }
 0x309   : > { %1397 = vrcp.f32 %v903_v58  ;;  %1063 = vst [vmem:[%s2135_s17 + $0xf0] sm:$0xff] %v1031_v2  ;;  %v1029_v56 = vsel %vm647_vm1, %v964_v21, %v997_v38 }
 0x30a   : > { %1061 = vst [vmem:[%s2135_s17 + $0xe0] sm:$0xff] %v1029_v56 }
 0x30e   : > { %v1396_v45 = vpop.eup %1395 }
 0x30f   : > { %v1398_v17 = vpop.eup %1397  ;;  %v965_v37 = vmul.f32 %v1396_v45, %v2283_v20 }
 0x310   : > { %v967_v14 = vmul.f32 %v1398_v17, %v2279_v57 }
 0x311   : > { %v1030_v60 = vsel %vm647_vm1, %v965_v37, %v998_v16 }
 0x312   : > { %1062 = vst [vmem:[%s2135_s17 + $0xe8] sm:$0xff] %v1030_v60  ;;  %v1032_v55 = vsel %vm647_vm1, %v967_v14, %v1000_v22 }
 0x313   : > { %1064 = vst [vmem:[%s2135_s17 + $0xf8] sm:$0xff] %v1032_v55 }
 0x314   : > { %1426 = shalt.err (!%p1423_p3)
}
 0x315   : > { %s1463_s15 = smov 128   ;;  %s1464_s16 = smov 8  }
 0x316   : > { %1228 = dma.vmem_to_hbm [thread:$0]  (%p1533_p5), %s1079_s30, 4096, %s1081_s6, %s1066_s8, %s1463_s15, %s1463_s15, %s1464_s16  }
 0x317 PF: > { %p1234_p4 = scmp.ge.s32.totalorder %s1461_s21, 2  ;;  %s1095_s17 = sand.u32 1, %s1449_s18  }
 0x318   : > { %s1096_s23 = scalar_lea.sflag [#allocation3], %s1095_s17 }
 0x319   : > { %p1231_p7 = pnand %p1234_p4, %p1537_p6 }
 0x31b   : > { %p1232_p8 = pneg %p1231_p7 }
 0x31d   : > { %1444 = dma.done.wait (%p1232_p8), %s1096_s23, 4096  }
 0x31e   : > { %1446 = vsyncadd (%p1232_p8), %s1096_s23, 4294963200  ;;  %p15_p9 = scmp.ge.s32.totalorder %s1520_s24, 4   ;;  %s2496_s18 = smov %s1453_s19 }
 0x31f   : > { %s2497_s19 = smov %s1457_s20  ;;  %s2498_s20 = smov %s1531_s27 }
 0x320   : > { %s2499_s21 = smov %s1520_s24  ;;  %17 = sbr.rel (!%p15_p9) target bundleno = 3 (0x3), region = 75 }
 0x325   :  { %1102 = vsyncpa [#allocation3], 1 }
 0x326   :  { %1104 = vsyncpa [#allocation3 + $0x1], 1 }

</bundles_post_ra>
